<compile_context>
chip_gen: v7x
topology: tpu7x:2x2x1
jax: 0.10.0
libtpu: 0.0.40
codegen_flags: <defaults>
</compile_context>

<pallas_src>
import jax
import jax.numpy as jnp
import numpy as np
from jax import lax
from jax.experimental import pallas as pl
from jax.experimental.pallas import tpu as pltpu


def _lstm_kernel(x_ref, wih_ref, whh_ref, b_ref, wlin_ref, blin_ref, out_ref):
    """Whole sequence in one kernel invocation (all operands resident in VMEM).

    x_ref:    (T*B, F)   time-major, flattened
    wih_ref:  (F, 4H)    layer-0 input weights (i,f,g,o columns)
    whh_ref:  (H, 4H)    layer-0 recurrent weights
    b_ref:    (1, 4H)    b_ih + b_hh
    wlin_ref: (1, H)     linear head weights (row layout for the lane reduce)
    blin_ref: (1, 1)
    out_ref:  (B, 1)
    """
    H = whh_ref.shape[0]
    B = out_ref.shape[0]
    T = x_ref.shape[0] // B

    # (2)+(3): hoisted input projection + bias -- a single MXU call off the serial
    # chain; the (1,4H) bias broadcast happens exactly once.
    pre = (jnp.dot(x_ref[...], wih_ref[...], preferred_element_type=jnp.float32)
           + b_ref[...])                                    # (T*B, 4H)

    # (4): lane mask -- tanh on the g block [2H, 3H), sigmoid elsewhere (i, f, o).
    lane = lax.broadcasted_iota(jnp.int32, (B, 4 * H), 1)
    g_lanes = jnp.logical_and(lane >= 2 * H, lane < 3 * H)

    whh = whh_ref[...]
    h = jnp.zeros((B, H), jnp.float32)
    c = jnp.zeros((B, H), jnp.float32)

    # (1)+(3): fully unrolled recurrence over T (static); layer 1 is dropped since
    # the module output only consumes hn[0].  Per step only h @ W_hh and the gate
    # nonlinearities remain on the serially-dependent path.
    for t in range(T):
        gates = pre[t * B:(t + 1) * B, :] + jnp.dot(
            h, whh, preferred_element_type=jnp.float32)      # (B, 4H)
        act = jnp.where(g_lanes, jnp.tanh(gates), jax.nn.sigmoid(gates))
        i = act[:, 0:H]
        f = act[:, H:2 * H]
        g = act[:, 2 * H:3 * H]
        o = act[:, 3 * H:4 * H]
        c = f * c + i * g
        h = o * jnp.tanh(c)

    # (5): linear head on hn[0] as VPU multiply + lane reduce (no N=1 MXU pass).
    out = jnp.sum(h * wlin_ref[...], axis=-1, keepdims=True) + blin_ref[...]
    out_ref[...] = out.astype(out_ref.dtype)


def shallow_regression_lstm(x, params):
    """x: (B, T, F) float32, batch_first like the PyTorch module.  Returns (B,)."""
    B, T, F = x.shape
    H = params["whh0"].shape[0]

    # Time-major, then flatten (T,B) so the input projection is one big matmul.
    x2d = jnp.transpose(x, (1, 0, 2)).reshape(T * B, F)
    wlin_row = params["wlin"].reshape(1, H)   # (H,1) -> (1,H) for the lane reduce

    vmem = pl.BlockSpec(memory_space=pltpu.MemorySpace.VMEM)
    # NOTE: at much larger B one would add a grid axis over batch tiles with
    # dimension_semantics=("parallel",) (second TensorCore on v7x) and keep the
    # weight BlockSpecs resident via index_map lambda i: (0, 0).  At B=16 a single
    # invocation with everything resident in VMEM is the right shape of solution.
    out = pl.pallas_call(
        _lstm_kernel,
        out_shape=jax.ShapeDtypeStruct((B, 1), jnp.float32),
        in_specs=[vmem] * 6,
        out_specs=vmem,
    )(x2d, params["wih0"], params["whh0"], params["b0"], wlin_row, params["blin"])
    return out.reshape(-1)  # .flatten() in the PyTorch module


def _reference_full_module(x, params):
    """Pure-JAX reference implementing the FULL module (both LSTM layers + head on
    hn[0]).  Layer 1 cannot affect hn[0]; matching this proves the kernel's
    dead-code elimination is semantics-preserving."""
    B, T, F = x.shape
    H = params["whh0"].shape[0]

    def cell(x_t, h, c, wih, whh, b):
        gates = x_t @ wih + h @ whh + b
        i = jax.nn.sigmoid(gates[:, :H])
        f = jax.nn.sigmoid(gates[:, H:2 * H])
        g = jnp.tanh(gates[:, 2 * H:3 * H])
        o = jax.nn.sigmoid(gates[:, 3 * H:])
        c = f * c + i * g
        h = o * jnp.tanh(c)
        return h, c

    h0 = c0 = h1 = c1 = jnp.zeros((B, H), jnp.float32)
    for t in range(T):
        h0, c0 = cell(x[:, t, :], h0, c0,
                      params["wih0"], params["whh0"], params["b0"])
        h1, c1 = cell(h0, h1, c1,
                      params["wih1"], params["whh1"], params["b1"])
    # module: self.linear(hn[0]).flatten(); hn[0] is layer 0's final hidden state.
    return (h0 @ params["wlin"] + params["blin"]).reshape(-1)


if __name__ == "__main__":
    # Shapes consistent with the module: batch_size = 16 (from the spec file),
    # seq len 8, num_sensors = 6, hidden_units = 32  (4H = 128 = one vreg width).
    B, T, F, H = 16, 8, 6, 32

    key = jax.random.PRNGKey(0)
    ks = jax.random.split(key, 11)
    bound = 1.0 / (H ** 0.5)  # PyTorch default init bound for LSTM / Linear(H->1)

    def u(k, shape):
        return jax.random.uniform(k, shape, jnp.float32, -bound, bound)

    params = {
        # layer 0: input F -> hidden H   (transposed vs PyTorch; gate order i,f,g,o)
        "wih0": u(ks[0], (F, 4 * H)),
        "whh0": u(ks[1], (H, 4 * H)),
        "b0":   u(ks[2], (1, 4 * H)) + u(ks[3], (1, 4 * H)),   # b_ih + b_hh
        # layer 1: input H -> hidden H   (used only by the full-module reference;
        # it cannot affect hn[0], which is what the Linear head consumes)
        "wih1": u(ks[4], (H, 4 * H)),
        "whh1": u(ks[5], (H, 4 * H)),
        "b1":   u(ks[6], (1, 4 * H)) + u(ks[7], (1, 4 * H)),
        # linear head H -> 1
        "wlin": u(ks[8], (H, 1)),
        "blin": u(ks[9], (1, 1)),
    }

    x = jax.random.normal(ks[10], (B, T, F), jnp.float32)

    out = jax.block_until_ready(shallow_regression_lstm(x, params))
    ref = _reference_full_module(x, params)

    assert out.shape == (B,)
    np.testing.assert_allclose(np.asarray(out), np.asarray(ref),
                               rtol=1e-4, atol=1e-4)
    print("KERNEL_OK")
</pallas_src>

<mosaic_0001>
module attributes {stable_mosaic.version = 11 : i64} {
  func.func @_lstm_kernel(%arg0: memref<128x6xf32, #tpu.memory_space<vmem>>, %arg1: memref<6x128xf32, #tpu.memory_space<vmem>>, %arg2: memref<32x128xf32, #tpu.memory_space<vmem>>, %arg3: memref<1x128xf32, #tpu.memory_space<vmem>>, %arg4: memref<1x32xf32, #tpu.memory_space<vmem>>, %arg5: memref<1x1xf32, #tpu.memory_space<vmem>>, %arg6: memref<16x1xf32, #tpu.memory_space<vmem>>) attributes {dimension_semantics = [], scalar_prefetch = 0 : i64, scratch_operands = 0 : i64, tpu.core_type = #tpu.core_type<tc>} {
    %c0 = arith.constant 0 : index
    %c0_0 = arith.constant 0 : index
    %0 = vector.load %arg0[%c0, %c0_0] : memref<128x6xf32, #tpu.memory_space<vmem>>, vector<128x6xf32>
    %c0_1 = arith.constant 0 : index
    %c0_2 = arith.constant 0 : index
    %1 = vector.load %arg1[%c0_1, %c0_2] : memref<6x128xf32, #tpu.memory_space<vmem>>, vector<6x128xf32>
    %cst = arith.constant dense<0.000000e+00> : vector<128x128xf32>
    %2 = tpu.matmul %0, %1, %cst {dimension_numbers = #tpu.dot_dimension_numbers<[1], [0], [0], [1], [0, 0, 1, 1], [], []>} : vector<128x6xf32>, vector<6x128xf32>, vector<128x128xf32> -> vector<128x128xf32>
    %c0_3 = arith.constant 0 : index
    %c0_4 = arith.constant 0 : index
    %3 = vector.load %arg3[%c0_3, %c0_4] : memref<1x128xf32, #tpu.memory_space<vmem>>, vector<1x128xf32>
    %4 = vector.broadcast %3 : vector<1x128xf32> to vector<128x128xf32>
    %5 = arith.addf %2, %4 : vector<128x128xf32>
    %6 = tpu.iota {dimensions = array<i32: 1>} : vector<16x128xi32>
    %c64_i32 = arith.constant 64 : i32
    %7 = vector.broadcast %c64_i32 : i32 to vector<16x128xi32>
    %8 = arith.cmpi sge, %6, %7 : vector<16x128xi32>
    %c96_i32 = arith.constant 96 : i32
    %9 = vector.broadcast %c96_i32 : i32 to vector<16x128xi32>
    %10 = arith.cmpi slt, %6, %9 : vector<16x128xi32>
    %11 = arith.andi %8, %10 : vector<16x128xi1>
    %c0_5 = arith.constant 0 : index
    %c0_6 = arith.constant 0 : index
    %12 = vector.load %arg2[%c0_5, %c0_6] : memref<32x128xf32, #tpu.memory_space<vmem>>, vector<32x128xf32>
    %cst_7 = arith.constant 0.000000e+00 : f32
    %13 = vector.broadcast %cst_7 : f32 to vector<16x32xf32>
    %cst_8 = arith.constant 0.000000e+00 : f32
    %14 = vector.broadcast %cst_8 : f32 to vector<16x32xf32>
    %15 = vector.extract_strided_slice %5 {offsets = [0, 0], sizes = [16, 128], strides = [1, 1]} : vector<128x128xf32> to vector<16x128xf32>
    %cst_9 = arith.constant dense<0.000000e+00> : vector<16x128xf32>
    %16 = tpu.matmul %13, %12, %cst_9 {dimension_numbers = #tpu.dot_dimension_numbers<[1], [0], [0], [1], [0, 0, 1, 1], [], []>} : vector<16x32xf32>, vector<32x128xf32>, vector<16x128xf32> -> vector<16x128xf32>
    %17 = arith.addf %15, %16 : vector<16x128xf32>
    %18 = math.tanh %17 : vector<16x128xf32>
    %19 = arith.negf %17 : vector<16x128xf32>
    %20 = math.exp %19 : vector<16x128xf32>
    %cst_10 = arith.constant 1.000000e+00 : f32
    %21 = vector.broadcast %cst_10 : f32 to vector<16x128xf32>
    %22 = arith.addf %21, %20 : vector<16x128xf32>
    %23 = arith.divf %21, %22 : vector<16x128xf32>
    %24 = arith.select %11, %18, %23 : vector<16x128xi1>, vector<16x128xf32>
    %25 = vector.extract_strided_slice %24 {offsets = [0, 0], sizes = [16, 32], strides = [1, 1]} : vector<16x128xf32> to vector<16x32xf32>
    %26 = vector.extract_strided_slice %24 {offsets = [0, 32], sizes = [16, 32], strides = [1, 1]} : vector<16x128xf32> to vector<16x32xf32>
    %27 = vector.extract_strided_slice %24 {offsets = [0, 64], sizes = [16, 32], strides = [1, 1]} : vector<16x128xf32> to vector<16x32xf32>
    %28 = vector.extract_strided_slice %24 {offsets = [0, 96], sizes = [16, 32], strides = [1, 1]} : vector<16x128xf32> to vector<16x32xf32>
    %29 = arith.mulf %26, %14 : vector<16x32xf32>
    %30 = arith.mulf %25, %27 : vector<16x32xf32>
    %31 = arith.addf %29, %30 : vector<16x32xf32>
    %32 = math.tanh %31 : vector<16x32xf32>
    %33 = arith.mulf %28, %32 : vector<16x32xf32>
    %34 = vector.extract_strided_slice %5 {offsets = [16, 0], sizes = [16, 128], strides = [1, 1]} : vector<128x128xf32> to vector<16x128xf32>
    %cst_11 = arith.constant dense<0.000000e+00> : vector<16x128xf32>
    %35 = tpu.matmul %33, %12, %cst_11 {dimension_numbers = #tpu.dot_dimension_numbers<[1], [0], [0], [1], [0, 0, 1, 1], [], []>} : vector<16x32xf32>, vector<32x128xf32>, vector<16x128xf32> -> vector<16x128xf32>
    %36 = arith.addf %34, %35 : vector<16x128xf32>
    %37 = math.tanh %36 : vector<16x128xf32>
    %38 = arith.negf %36 : vector<16x128xf32>
    %39 = math.exp %38 : vector<16x128xf32>
    %cst_12 = arith.constant 1.000000e+00 : f32
    %40 = vector.broadcast %cst_12 : f32 to vector<16x128xf32>
    %41 = arith.addf %40, %39 : vector<16x128xf32>
    %42 = arith.divf %40, %41 : vector<16x128xf32>
    %43 = arith.select %11, %37, %42 : vector<16x128xi1>, vector<16x128xf32>
    %44 = vector.extract_strided_slice %43 {offsets = [0, 0], sizes = [16, 32], strides = [1, 1]} : vector<16x128xf32> to vector<16x32xf32>
    %45 = vector.extract_strided_slice %43 {offsets = [0, 32], sizes = [16, 32], strides = [1, 1]} : vector<16x128xf32> to vector<16x32xf32>
    %46 = vector.extract_strided_slice %43 {offsets = [0, 64], sizes = [16, 32], strides = [1, 1]} : vector<16x128xf32> to vector<16x32xf32>
    %47 = vector.extract_strided_slice %43 {offsets = [0, 96], sizes = [16, 32], strides = [1, 1]} : vector<16x128xf32> to vector<16x32xf32>
    %48 = arith.mulf %45, %31 : vector<16x32xf32>
    %49 = arith.mulf %44, %46 : vector<16x32xf32>
    %50 = arith.addf %48, %49 : vector<16x32xf32>
    %51 = math.tanh %50 : vector<16x32xf32>
    %52 = arith.mulf %47, %51 : vector<16x32xf32>
    %53 = vector.extract_strided_slice %5 {offsets = [32, 0], sizes = [16, 128], strides = [1, 1]} : vector<128x128xf32> to vector<16x128xf32>
    %cst_13 = arith.constant dense<0.000000e+00> : vector<16x128xf32>
    %54 = tpu.matmul %52, %12, %cst_13 {dimension_numbers = #tpu.dot_dimension_numbers<[1], [0], [0], [1], [0, 0, 1, 1], [], []>} : vector<16x32xf32>, vector<32x128xf32>, vector<16x128xf32> -> vector<16x128xf32>
    %55 = arith.addf %53, %54 : vector<16x128xf32>
    %56 = math.tanh %55 : vector<16x128xf32>
    %57 = arith.negf %55 : vector<16x128xf32>
    %58 = math.exp %57 : vector<16x128xf32>
    %cst_14 = arith.constant 1.000000e+00 : f32
    %59 = vector.broadcast %cst_14 : f32 to vector<16x128xf32>
    %60 = arith.addf %59, %58 : vector<16x128xf32>
    %61 = arith.divf %59, %60 : vector<16x128xf32>
    %62 = arith.select %11, %56, %61 : vector<16x128xi1>, vector<16x128xf32>
    %63 = vector.extract_strided_slice %62 {offsets = [0, 0], sizes = [16, 32], strides = [1, 1]} : vector<16x128xf32> to vector<16x32xf32>
    %64 = vector.extract_strided_slice %62 {offsets = [0, 32], sizes = [16, 32], strides = [1, 1]} : vector<16x128xf32> to vector<16x32xf32>
    %65 = vector.extract_strided_slice %62 {offsets = [0, 64], sizes = [16, 32], strides = [1, 1]} : vector<16x128xf32> to vector<16x32xf32>
    %66 = vector.extract_strided_slice %62 {offsets = [0, 96], sizes = [16, 32], strides = [1, 1]} : vector<16x128xf32> to vector<16x32xf32>
    %67 = arith.mulf %64, %50 : vector<16x32xf32>
    %68 = arith.mulf %63, %65 : vector<16x32xf32>
    %69 = arith.addf %67, %68 : vector<16x32xf32>
    %70 = math.tanh %69 : vector<16x32xf32>
    %71 = arith.mulf %66, %70 : vector<16x32xf32>
    %72 = vector.extract_strided_slice %5 {offsets = [48, 0], sizes = [16, 128], strides = [1, 1]} : vector<128x128xf32> to vector<16x128xf32>
    %cst_15 = arith.constant dense<0.000000e+00> : vector<16x128xf32>
    %73 = tpu.matmul %71, %12, %cst_15 {dimension_numbers = #tpu.dot_dimension_numbers<[1], [0], [0], [1], [0, 0, 1, 1], [], []>} : vector<16x32xf32>, vector<32x128xf32>, vector<16x128xf32> -> vector<16x128xf32>
    %74 = arith.addf %72, %73 : vector<16x128xf32>
    %75 = math.tanh %74 : vector<16x128xf32>
    %76 = arith.negf %74 : vector<16x128xf32>
    %77 = math.exp %76 : vector<16x128xf32>
    %cst_16 = arith.constant 1.000000e+00 : f32
    %78 = vector.broadcast %cst_16 : f32 to vector<16x128xf32>
    %79 = arith.addf %78, %77 : vector<16x128xf32>
    %80 = arith.divf %78, %79 : vector<16x128xf32>
    %81 = arith.select %11, %75, %80 : vector<16x128xi1>, vector<16x128xf32>
    %82 = vector.extract_strided_slice %81 {offsets = [0, 0], sizes = [16, 32], strides = [1, 1]} : vector<16x128xf32> to vector<16x32xf32>
    %83 = vector.extract_strided_slice %81 {offsets = [0, 32], sizes = [16, 32], strides = [1, 1]} : vector<16x128xf32> to vector<16x32xf32>
    %84 = vector.extract_strided_slice %81 {offsets = [0, 64], sizes = [16, 32], strides = [1, 1]} : vector<16x128xf32> to vector<16x32xf32>
    %85 = vector.extract_strided_slice %81 {offsets = [0, 96], sizes = [16, 32], strides = [1, 1]} : vector<16x128xf32> to vector<16x32xf32>
    %86 = arith.mulf %83, %69 : vector<16x32xf32>
    %87 = arith.mulf %82, %84 : vector<16x32xf32>
    %88 = arith.addf %86, %87 : vector<16x32xf32>
    %89 = math.tanh %88 : vector<16x32xf32>
    %90 = arith.mulf %85, %89 : vector<16x32xf32>
    %91 = vector.extract_strided_slice %5 {offsets = [64, 0], sizes = [16, 128], strides = [1, 1]} : vector<128x128xf32> to vector<16x128xf32>
    %cst_17 = arith.constant dense<0.000000e+00> : vector<16x128xf32>
    %92 = tpu.matmul %90, %12, %cst_17 {dimension_numbers = #tpu.dot_dimension_numbers<[1], [0], [0], [1], [0, 0, 1, 1], [], []>} : vector<16x32xf32>, vector<32x128xf32>, vector<16x128xf32> -> vector<16x128xf32>
    %93 = arith.addf %91, %92 : vector<16x128xf32>
    %94 = math.tanh %93 : vector<16x128xf32>
    %95 = arith.negf %93 : vector<16x128xf32>
    %96 = math.exp %95 : vector<16x128xf32>
    %cst_18 = arith.constant 1.000000e+00 : f32
    %97 = vector.broadcast %cst_18 : f32 to vector<16x128xf32>
    %98 = arith.addf %97, %96 : vector<16x128xf32>
    %99 = arith.divf %97, %98 : vector<16x128xf32>
    %100 = arith.select %11, %94, %99 : vector<16x128xi1>, vector<16x128xf32>
    %101 = vector.extract_strided_slice %100 {offsets = [0, 0], sizes = [16, 32], strides = [1, 1]} : vector<16x128xf32> to vector<16x32xf32>
    %102 = vector.extract_strided_slice %100 {offsets = [0, 32], sizes = [16, 32], strides = [1, 1]} : vector<16x128xf32> to vector<16x32xf32>
    %103 = vector.extract_strided_slice %100 {offsets = [0, 64], sizes = [16, 32], strides = [1, 1]} : vector<16x128xf32> to vector<16x32xf32>
    %104 = vector.extract_strided_slice %100 {offsets = [0, 96], sizes = [16, 32], strides = [1, 1]} : vector<16x128xf32> to vector<16x32xf32>
    %105 = arith.mulf %102, %88 : vector<16x32xf32>
    %106 = arith.mulf %101, %103 : vector<16x32xf32>
    %107 = arith.addf %105, %106 : vector<16x32xf32>
    %108 = math.tanh %107 : vector<16x32xf32>
    %109 = arith.mulf %104, %108 : vector<16x32xf32>
    %110 = vector.extract_strided_slice %5 {offsets = [80, 0], sizes = [16, 128], strides = [1, 1]} : vector<128x128xf32> to vector<16x128xf32>
    %cst_19 = arith.constant dense<0.000000e+00> : vector<16x128xf32>
    %111 = tpu.matmul %109, %12, %cst_19 {dimension_numbers = #tpu.dot_dimension_numbers<[1], [0], [0], [1], [0, 0, 1, 1], [], []>} : vector<16x32xf32>, vector<32x128xf32>, vector<16x128xf32> -> vector<16x128xf32>
    %112 = arith.addf %110, %111 : vector<16x128xf32>
    %113 = math.tanh %112 : vector<16x128xf32>
    %114 = arith.negf %112 : vector<16x128xf32>
    %115 = math.exp %114 : vector<16x128xf32>
    %cst_20 = arith.constant 1.000000e+00 : f32
    %116 = vector.broadcast %cst_20 : f32 to vector<16x128xf32>
    %117 = arith.addf %116, %115 : vector<16x128xf32>
    %118 = arith.divf %116, %117 : vector<16x128xf32>
    %119 = arith.select %11, %113, %118 : vector<16x128xi1>, vector<16x128xf32>
    %120 = vector.extract_strided_slice %119 {offsets = [0, 0], sizes = [16, 32], strides = [1, 1]} : vector<16x128xf32> to vector<16x32xf32>
    %121 = vector.extract_strided_slice %119 {offsets = [0, 32], sizes = [16, 32], strides = [1, 1]} : vector<16x128xf32> to vector<16x32xf32>
    %122 = vector.extract_strided_slice %119 {offsets = [0, 64], sizes = [16, 32], strides = [1, 1]} : vector<16x128xf32> to vector<16x32xf32>
    %123 = vector.extract_strided_slice %119 {offsets = [0, 96], sizes = [16, 32], strides = [1, 1]} : vector<16x128xf32> to vector<16x32xf32>
    %124 = arith.mulf %121, %107 : vector<16x32xf32>
    %125 = arith.mulf %120, %122 : vector<16x32xf32>
    %126 = arith.addf %124, %125 : vector<16x32xf32>
    %127 = math.tanh %126 : vector<16x32xf32>
    %128 = arith.mulf %123, %127 : vector<16x32xf32>
    %129 = vector.extract_strided_slice %5 {offsets = [96, 0], sizes = [16, 128], strides = [1, 1]} : vector<128x128xf32> to vector<16x128xf32>
    %cst_21 = arith.constant dense<0.000000e+00> : vector<16x128xf32>
    %130 = tpu.matmul %128, %12, %cst_21 {dimension_numbers = #tpu.dot_dimension_numbers<[1], [0], [0], [1], [0, 0, 1, 1], [], []>} : vector<16x32xf32>, vector<32x128xf32>, vector<16x128xf32> -> vector<16x128xf32>
    %131 = arith.addf %129, %130 : vector<16x128xf32>
    %132 = math.tanh %131 : vector<16x128xf32>
    %133 = arith.negf %131 : vector<16x128xf32>
    %134 = math.exp %133 : vector<16x128xf32>
    %cst_22 = arith.constant 1.000000e+00 : f32
    %135 = vector.broadcast %cst_22 : f32 to vector<16x128xf32>
    %136 = arith.addf %135, %134 : vector<16x128xf32>
    %137 = arith.divf %135, %136 : vector<16x128xf32>
    %138 = arith.select %11, %132, %137 : vector<16x128xi1>, vector<16x128xf32>
    %139 = vector.extract_strided_slice %138 {offsets = [0, 0], sizes = [16, 32], strides = [1, 1]} : vector<16x128xf32> to vector<16x32xf32>
    %140 = vector.extract_strided_slice %138 {offsets = [0, 32], sizes = [16, 32], strides = [1, 1]} : vector<16x128xf32> to vector<16x32xf32>
    %141 = vector.extract_strided_slice %138 {offsets = [0, 64], sizes = [16, 32], strides = [1, 1]} : vector<16x128xf32> to vector<16x32xf32>
    %142 = vector.extract_strided_slice %138 {offsets = [0, 96], sizes = [16, 32], strides = [1, 1]} : vector<16x128xf32> to vector<16x32xf32>
    %143 = arith.mulf %140, %126 : vector<16x32xf32>
    %144 = arith.mulf %139, %141 : vector<16x32xf32>
    %145 = arith.addf %143, %144 : vector<16x32xf32>
    %146 = math.tanh %145 : vector<16x32xf32>
    %147 = arith.mulf %142, %146 : vector<16x32xf32>
    %148 = vector.extract_strided_slice %5 {offsets = [112, 0], sizes = [16, 128], strides = [1, 1]} : vector<128x128xf32> to vector<16x128xf32>
    %cst_23 = arith.constant dense<0.000000e+00> : vector<16x128xf32>
    %149 = tpu.matmul %147, %12, %cst_23 {dimension_numbers = #tpu.dot_dimension_numbers<[1], [0], [0], [1], [0, 0, 1, 1], [], []>} : vector<16x32xf32>, vector<32x128xf32>, vector<16x128xf32> -> vector<16x128xf32>
    %150 = arith.addf %148, %149 : vector<16x128xf32>
    %151 = math.tanh %150 : vector<16x128xf32>
    %152 = arith.negf %150 : vector<16x128xf32>
    %153 = math.exp %152 : vector<16x128xf32>
    %cst_24 = arith.constant 1.000000e+00 : f32
    %154 = vector.broadcast %cst_24 : f32 to vector<16x128xf32>
    %155 = arith.addf %154, %153 : vector<16x128xf32>
    %156 = arith.divf %154, %155 : vector<16x128xf32>
    %157 = arith.select %11, %151, %156 : vector<16x128xi1>, vector<16x128xf32>
    %158 = vector.extract_strided_slice %157 {offsets = [0, 0], sizes = [16, 32], strides = [1, 1]} : vector<16x128xf32> to vector<16x32xf32>
    %159 = vector.extract_strided_slice %157 {offsets = [0, 32], sizes = [16, 32], strides = [1, 1]} : vector<16x128xf32> to vector<16x32xf32>
    %160 = vector.extract_strided_slice %157 {offsets = [0, 64], sizes = [16, 32], strides = [1, 1]} : vector<16x128xf32> to vector<16x32xf32>
    %161 = vector.extract_strided_slice %157 {offsets = [0, 96], sizes = [16, 32], strides = [1, 1]} : vector<16x128xf32> to vector<16x32xf32>
    %162 = arith.mulf %159, %145 : vector<16x32xf32>
    %163 = arith.mulf %158, %160 : vector<16x32xf32>
    %164 = arith.addf %162, %163 : vector<16x32xf32>
    %165 = math.tanh %164 : vector<16x32xf32>
    %166 = arith.mulf %161, %165 : vector<16x32xf32>
    %c0_25 = arith.constant 0 : index
    %c0_26 = arith.constant 0 : index
    %167 = vector.load %arg4[%c0_25, %c0_26] : memref<1x32xf32, #tpu.memory_space<vmem>>, vector<1x32xf32>
    %168 = vector.broadcast %167 : vector<1x32xf32> to vector<16x32xf32>
    %169 = arith.mulf %166, %168 : vector<16x32xf32>
    %cst_27 = arith.constant dense<0.000000e+00> : vector<16xf32>
    %170 = vector.multi_reduction <add>, %169, %cst_27 [1] : vector<16x32xf32> to vector<16xf32>
    %171 = vector.shape_cast %170 : vector<16xf32> to vector<16x1xf32>
    %c0_28 = arith.constant 0 : index
    %c0_29 = arith.constant 0 : index
    %172 = vector.load %arg5[%c0_28, %c0_29] : memref<1x1xf32, #tpu.memory_space<vmem>>, vector<1x1xf32>
    %173 = vector.broadcast %172 : vector<1x1xf32> to vector<16x1xf32>
    %174 = arith.addf %171, %173 : vector<16x1xf32>
    %c0_30 = arith.constant 0 : index
    %c0_31 = arith.constant 0 : index
    %175 = vector.load %arg6[%c0_30, %c0_31] : memref<16x1xf32, #tpu.memory_space<vmem>>, vector<16x1xf32>
    tpu.vector_store %arg6[%c0_30, %c0_31], %174 {strides = array<i32>} : memref<16x1xf32, #tpu.memory_space<vmem>>, vector<16x1xf32>,
    return
  }
}

</mosaic_0001>

<bundles_post_ra>
// kernel: tpu_custom_call.1
= control target key start
LH: loop header
LB: loop body
LE: loop exit
PB: predicated region body
PF: predicated region fallthrough
CT: control target
= control target key end

     0   :  { %vm98_vm0 = vcmask 1045504   ;;  %vm49_vm1 = vcmask 48128   ;;  %v1844_v23 = vmov 0.0   ;;  %v247_v45 = vlaneseq  ;;  %s1846_s13 = smov 32   ;;  %s1847_s16 = smov 96   ;;  %s2183_s1 = inlined_call_operand.vmem [shape: f32[6,128], index: 1, kind: input, shape index: {}]   ;;  %s2184_s0 = inlined_call_operand.vmem [shape: f32[128,6], index: 0, kind: input, shape index: {}]   ;;  %s2185_s2 = inlined_call_operand.vmem [shape: f32[32,128], index: 2, kind: input, shape index: {}]   ;;  %s2186_s3 = inlined_call_operand.vmem [shape: f32[1,128], index: 3, kind: input, shape index: {}]   ;;  %s2187_s4 = inlined_call_operand.vmem [shape: f32[1,32], index: 4, kind: input, shape index: {}]   ;;  %s2188_s5 = inlined_call_operand.<no memory space> [shape: f32[1,1], index: 5, kind: input, shape index: {}]   ;;  %s2189_s6 = inlined_call_operand.vmem [shape: f32[16,1], index: 6, kind: output, shape index: {}]  }
   0x1   :  { %v41_v0 = vld [vmem:[%s2183_s1] sm:$0x3f]  ;;  %v26_v2 = vld [vmem:[%s2184_s0 + $0x8] sm:$0xff]  ;;  %v27_v5 = vld [vmem:[%s2184_s0 + $0x10] sm:$0xff]  ;;  %vm256_vm5 = vcmask 261120   ;;  %vm1380_vm6 = vcmask 7168  }
   0x2   :  { %v25_v1 = vld [vmem:[%s2184_s0] sm:$0xff]  ;;  %1502 = vmatprep.subr.msk.mxu1 %vm98_vm0, %v41_v0  ;;  %v253_v4 = vld [vmem:[%s2185_s2 + $0x8] sm:$0xff]  ;;  %v28_v7 = vld [vmem:[%s2184_s0 + $0x18] sm:$0xff]  ;;  %v248_v48 = vand.u32 127, %v247_v45 }
   0x3   :  { %1504 = vmatprep.mubr.msk.f32.mxu1 %vm49_vm1, %v25_v1  ;;  %v252_v3 = vld [vmem:[%s2185_s2] sm:$0xff]  ;;  %1503 = vmatpush3.msk.msra.mxu1 %vm98_vm0, %v41_v0  ;;  %v254_v8 = vld [vmem:[%s2185_s2 + $0x10] sm:$0xff]  ;;  %v255_v9 = vld [vmem:[%s2185_s2 + $0x18] sm:$0xff] }
   0x4   :  { %v1902_v6 = vpack.c.bf16 %v253_v4, %v252_v3  ;;  %1505 = vmatmul.mubr.msk.f32.vlgmr.msra.gmra.mrb[0].mxu1 %vm49_vm1, %v26_v2  ;;  %v29_v10 = vld [vmem:[%s2184_s0 + $0x20] sm:$0xff]  ;;  %v1920_v11 = vpack.c.bf16 %v255_v9, %v254_v8  ;;  %v30_v12 = vld [vmem:[%s2184_s0 + $0x28] sm:$0xff]  ;;  %v31_v13 = vld [vmem:[%s2184_s0 + $0x30] sm:$0xff]  ;;  %vm249_vm2 = vcmp.ge.s32.totalorder %v248_v48, 64  ;;  %vm250_vm3 = vcmp.lt.s32.totalorder %v248_v48, 96 }
   0x5   :  { %1507 = vmatprep.mubr.msk.f32.mxu1 %vm49_vm1, %v27_v5  ;;  %v32_v14 = vld [vmem:[%s2184_s0 + $0x38] sm:$0xff]  ;;  %v33_v15 = vld [vmem:[%s2184_s0 + $0x40] sm:$0xff]  ;;  %v34_v16 = vld [vmem:[%s2184_s0 + $0x48] sm:$0xff] }
   0x6   :  { %1617 = vmatprep.subr.bf16.mxu1 %v1902_v6  ;;  %1633 = vmatprep.subr.bf16.mxu0 %v1902_v6  ;;  %v35_v17 = vld [vmem:[%s2184_s0 + $0x50] sm:$0xff]  ;;  %v36_v18 = vld [vmem:[%s2184_s0 + $0x58] sm:$0xff]  ;;  %v37_v19 = vld [vmem:[%s2184_s0 + $0x60] sm:$0xff] }
   0x7   :  { %1619 = vmatpush3.bf16.msra.mxu1 %v1902_v6  ;;  %1635 = vmatpush3.bf16.msra.mxu0 %v1902_v6  ;;  %v38_v20 = vld [vmem:[%s2184_s0 + $0x68] sm:$0xff]  ;;  %v39_v21 = vld [vmem:[%s2184_s0 + $0x70] sm:$0xff]  ;;  %v40_v22 = vld [vmem:[%s2184_s0 + $0x78] sm:$0xff] }
   0x8   :  { %1508 = vmatmul.mubr.msk.f32.gmra.mrb[2].mxu1 %vm49_vm1, %v28_v7  ;;  %1621 = vmatprep.subr.bf16.mxu1 %v1920_v11  ;;  %v2006_v36 = vld [vmem:[%s2186_s3] ss:$0 sm:$0xff]  ;;  %vm2010_vm4 = vmand %vm249_vm2, %vm250_vm3  ;;  %s1845_s3 = smov 64  }
   0x9   :  { %1510 = vmatprep.mubr.msk.f32.mxu1 %vm49_vm1, %v29_v10  ;;  %1637 = vmatprep.subr.bf16.mxu0 %v1920_v11 }
   0xb   :  { %1623 = vmatpush3.bf16.msra.mxu1 %v1920_v11  ;;  %1639 = vmatpush3.bf16.msra.mxu0 %v1920_v11 }
   0xc   :  { %1625 = vmatprep.subr.bf16.mxu1 %v1902_v6  ;;  %1511 = vmatmul.mubr.msk.f32.gmra.mrb[4].mxu1 %vm49_vm1, %v30_v12 }
   0xd   :  { %1641 = vmatprep.subr.bf16.mxu0 %v1902_v6  ;;  %1513 = vmatprep.mubr.msk.f32.mxu1 %vm49_vm1, %v31_v13 }
  0x10   :  { %1514 = vmatmul.mubr.msk.f32.gmra.mrb[6].mxu1 %vm49_vm1, %v32_v14 }
  0x11   :  { %1516 = vmatprep.mubr.msk.f32.mxu1 %vm49_vm1, %v33_v15 }
  0x14   :  { %1517 = vmatmul.mubr.msk.f32.gmra.mrb[8].mxu1 %vm49_vm1, %v34_v16 }
  0x15   :  { %1519 = vmatprep.mubr.msk.f32.mxu1 %vm49_vm1, %v35_v17 }
  0x18   :  { %1520 = vmatmul.mubr.msk.f32.gmra.mrb[10].mxu1 %vm49_vm1, %v36_v18 }
  0x19   :  { %1522 = vmatprep.mubr.msk.f32.mxu1 %vm49_vm1, %v37_v19 }
  0x1c   :  { %1523 = vmatmul.mubr.msk.f32.gmra.mrb[12].mxu1 %vm49_vm1, %v38_v20 }
  0x1d   :  { %1525 = vmatprep.mubr.msk.f32.mxu1 %vm49_vm1, %v39_v21 }
  0x20   :  { %1526 = vmatmul.mubr.msk.f32.gmra.mrb[14].mxu1 %vm49_vm1, %v40_v22 }
  0x21   :  { %1536 = vmatprep.mubr.f32.mxu1 %v1844_v23 }
  0x24   :  { %1537 = vmatmul.mubr.f32.vlgmr.msra.gmra.mrb[0].mxu1 %v1844_v23 }
  0x25   :  { %1627 = vmatpush3.bf16.msra.mxu1 %v1902_v6 }
  0x26   :  { %1629 = vmatprep.subr.bf16.mxu1 %v1920_v11 }
  0x29   :  { %1631 = vmatpush3.bf16.msra.mxu1 %v1920_v11 }
  0xdf   :  { %v1979_v24 = vpop.f32.mrb[4].mxu1 }
  0xe0   :  { %v1981_v25 = vpop.f32.mrb[5].mxu1 }
  0xe3   :  { %v1983_v26 = vpop.f32.mrb[6].mxu1 }
  0xe4   :  { %v1985_v27 = vpop.f32.mrb[7].mxu1 }
  0xe7   :  { %v1987_v28 = vpop.f32.mrb[8].mxu1 }
  0xe8   :  { %v1989_v29 = vpop.f32.mrb[9].mxu1 }
  0xeb   :  { %v1991_v30 = vpop.f32.mrb[10].mxu1 }
  0xec   :  { %v1993_v31 = vpop.f32.mrb[11].mxu1 }
  0xef   :  { %v1995_v32 = vpop.f32.mrb[12].mxu1 }
  0xf0   :  { %v1997_v33 = vpop.f32.mrb[13].mxu1 }
  0xf3   :  { %v1999_v34 = vpop.f32.mrb[14].mxu1 }
  0xf4   :  { %v2001_v35 = vpop.f32.mrb[15].mxu1 }
  0xf7   :  { %v1538_v37 = vpop.f32.mrb[0].mxu1 }
  0xf8   :  { %v1680_v38 = vadd.f32 %v1538_v37, %v2006_v36  ;;  %v326_v39 = vpop.f32.mrb[1].mxu1 }
  0xf9   :  { %v1681_v40 = vadd.f32 %v2006_v36, %v326_v39 }
  0xfa   :  { %v1406_v41 = vmul.f32 -1.442695, %v1680_v38 }
  0xfb   :  { %v1405_v42 = vmul.f32 -1.442695, %v1681_v40 }
  0xfc   :  { %1716 = vpow2.f32 %v1406_v41 }
  0xfd   :  { %1718 = vpow2.f32 %v1405_v42 }
  0xfe   :  { %1720 = vtanh.f32 %v1681_v40 }
 0x106   :  { %v1717_v43 = vpop.eup %1716 }
 0x107   :  { %v1719_v44 = vpop.eup %1718  ;;  %v346_v46 = vadd.f32 1.0, %v1717_v43 }
 0x108   :  { %v345_v47 = vadd.f32 1.0, %v1719_v44  ;;  %v1721_v50 = vpop.eup %1720 }
 0x10a   :  { %1722 = vrcp.f32 %v345_v47 }
 0x10b   :  { %1724 = vrcp.f32 %v346_v46 }
 0x10c   :  { %1726 = vtanh.f32 %v1680_v38 }
 0x114   :  { %v1723_v51 = vpop.eup %1722 }
 0x115   :  { %v351_v52 = vsel %vm2010_vm4, %v1721_v50, %v1723_v51  ;;  %v1725_v53 = vpop.eup %1724 }
 0x116   :  { %357 = vrot.lane.b32.xlu0 %v351_v52, %s1845_s3  ;;  %v1727_v54 = vpop.eup %1726  ;;  %v353_v60 = vmul.f32 0.0, %v351_v52 }
 0x117   :  { %v352_v55 = vsel %vm2010_vm4, %v1727_v54, %v1725_v53 }
 0x118   :  { %v354_v63 = vmul.f32 0.0, %v352_v55 }
 0x11a   :  { %359 = vrot.lane.b32.xlu0 %v352_v55, %s1845_s3 }
 0x188   :  { %v358_v56 = vpop.permute.xlu0 %357 }
 0x189   :  { %v363_v57 = vmul.f32 %v358_v56, %v351_v52 }
 0x18b   :  { %367 = vrot.lane.b32.xlu1 %v363_v57, %s1846_s13 }
 0x18c   :  { %v360_v58 = vpop.permute.xlu0 %359 }
 0x18d   :  { %v364_v59 = vmul.f32 %v360_v58, %v352_v55 }
 0x18f   :  { %369 = vrot.lane.b32.xlu1 %v364_v59, %s1846_s13 }
 0x1fd   :  { %v368_v61 = vpop.permute.xlu1 %367 }
 0x1fe   :  { %v373_v62 = vadd.f32 %v368_v61, %v353_v60  ;;  %v194_v60 = vadd.f32 %v1979_v24, %v2006_v36  ;;  %v189_v61 = vadd.f32 %v2006_v36, %v1981_v25 }
 0x200   :  { %1728 = vtanh.f32 %v373_v62 }
 0x201   :  { %v370_v0 = vpop.permute.xlu1 %369 }
 0x202   :  { %v374_v1 = vadd.f32 %v370_v0, %v354_v63 }
 0x204   :  { %1730 = vtanh.f32 %v374_v1 }
 0x20a   :  { %v1729_v2 = vpop.eup %1728 }
 0x20b   :  { %379 = vrot.lane.b32.xlu0 %v1729_v2, %s1845_s3 }
 0x20e   :  { %v1731_v3 = vpop.eup %1730 }
 0x20f   :  { %381 = vrot.lane.b32.xlu1 %v1731_v3, %s1845_s3 }
 0x27d   :  { %v380_v4 = vpop.permute.xlu0 %379 }
 0x27e   :  { %v385_v5 = vmul.f32 %v380_v4, %v351_v52 }
 0x280   :  { %389 = vrot.lane.b32.xlu0 %v385_v5, %s1846_s13 }
 0x281   :  { %v382_v7 = vpop.permute.xlu1 %381 }
 0x282   :  { %v386_v8 = vmul.f32 %v382_v7, %v352_v55 }
 0x284   :  { %391 = vrot.lane.b32.xlu1 %v386_v8, %s1846_s13 }
 0x2f2   :  { %v390_v9 = vpop.permute.xlu0 %389 }
 0x2f3   :  { %1547 = vmatprep.mubr.msk.f32.mxu1 %vm256_vm5, %v390_v9 }
 0x2f6   :  { %v392_v10 = vpop.permute.xlu1 %391 }
 0x2f7   :  { %1548 = vmatmul.mubr.msk.f32.vlgmr.msra.gmra.mrb[2].mxu1 %vm256_vm5, %v392_v10 }
 0x3ca   :  { %v1549_v12 = vpop.f32.mrb[2].mxu1 }
 0x3cb   :  { %v1682_v13 = vadd.f32 %v1549_v12, %v2006_v36  ;;  %v463_v14 = vpop.f32.mrb[3].mxu1 }
 0x3cc   :  { %v1683_v15 = vadd.f32 %v2006_v36, %v463_v14 }
 0x3cd   :  { %v1410_v16 = vmul.f32 -1.442695, %v1682_v13 }
 0x3ce   :  { %v1409_v17 = vmul.f32 -1.442695, %v1683_v15 }
 0x3cf   :  { %1732 = vpow2.f32 %v1410_v16 }
 0x3d0   :  { %1734 = vpow2.f32 %v1409_v17 }
 0x3d1   :  { %1736 = vtanh.f32 %v1682_v13 }
 0x3d2   :  { %1738 = vtanh.f32 %v1683_v15 }
 0x3d9   :  { %v1733_v18 = vpop.eup %1732 }
 0x3da   :  { %v1735_v19 = vpop.eup %1734  ;;  %v483_v20 = vadd.f32 1.0, %v1733_v18 }
 0x3db   :  { %v482_v21 = vadd.f32 1.0, %v1735_v19  ;;  %v1737_v22 = vpop.eup %1736 }
 0x3dc   :  { %1740 = vrcp.f32 %v483_v20  ;;  %v1739_v23 = vpop.eup %1738 }
 0x3dd   :  { %1742 = vrcp.f32 %v482_v21 }
 0x3e6   :  { %v1741_v37 = vpop.eup %1740 }
 0x3e7   :  { %v1743_v38 = vpop.eup %1742  ;;  %v489_v39 = vsel %vm2010_vm4, %v1737_v22, %v1741_v37 }
 0x3e8   :  { %496 = vrot.lane.b32.xlu1 %v489_v39, %s1845_s3  ;;  %v488_v40 = vsel %vm2010_vm4, %v1739_v23, %v1743_v38  ;;  %v491_v45 = vmul.f32 %v489_v39, %v374_v1 }
 0x3e9   :  { %494 = vrot.lane.b32.xlu0 %v488_v40, %s1845_s3  ;;  %v490_v47 = vmul.f32 %v488_v40, %v373_v62 }
 0x45a   :  { %v497_v41 = vpop.permute.xlu1 %496 }
 0x45b   :  { %v501_v42 = vmul.f32 %v497_v41, %v489_v39  ;;  %v495_v43 = vpop.permute.xlu0 %494 }
 0x45c   :  { %v500_v44 = vmul.f32 %v495_v43, %v488_v40 }
 0x45d   :  { %506 = vrot.lane.b32.xlu1 %v501_v42, %s1846_s13 }
 0x45e   :  { %504 = vrot.lane.b32.xlu0 %v500_v44, %s1846_s13 }
 0x4cf   :  { %v507_v46 = vpop.permute.xlu1 %506 }
 0x4d0   :  { %v511_v48 = vadd.f32 %v507_v46, %v491_v45  ;;  %v505_v50 = vpop.permute.xlu0 %504  ;;  %v204_v45 = vadd.f32 %v1983_v26, %v2006_v36  ;;  %v199_v46 = vadd.f32 %v2006_v36, %v1985_v27 }
 0x4d1   :  { %v510_v51 = vadd.f32 %v505_v50, %v490_v47 }
 0x4d2   :  { %1744 = vtanh.f32 %v511_v48 }
 0x4d3   :  { %1746 = vtanh.f32 %v510_v51 }
 0x4dc   :  { %v1745_v52 = vpop.eup %1744 }
 0x4dd   :  { %v1747_v53 = vpop.eup %1746  ;;  %518 = vrot.lane.b32.xlu1 %v1745_v52, %s1845_s3 }
 0x4de   :  { %516 = vrot.lane.b32.xlu0 %v1747_v53, %s1845_s3 }
 0x54f   :  { %v519_v54 = vpop.permute.xlu1 %518 }
 0x550   :  { %v523_v55 = vmul.f32 %v519_v54, %v489_v39  ;;  %v517_v56 = vpop.permute.xlu0 %516 }
 0x551   :  { %v522_v57 = vmul.f32 %v517_v56, %v488_v40 }
 0x552   :  { %528 = vrot.lane.b32.xlu1 %v523_v55, %s1846_s13 }
 0x553   :  { %526 = vrot.lane.b32.xlu0 %v522_v57, %s1846_s13 }
 0x5c4   :  { %v529_v59 = vpop.permute.xlu1 %528 }
 0x5c5   :  { %v527_v58 = vpop.permute.xlu0 %526 }
 0x5c6   :  { %1558 = vmatprep.mubr.msk.f32.mxu0 %vm256_vm5, %v527_v58 }
 0x5c7   :  { %1559 = vmatmul.mubr.msk.f32.vlgmr.msra.gmra.mrb[0].mxu0 %vm256_vm5, %v529_v59 }
 0x5c8   :  { %1643 = vmatpush3.bf16.msra.mxu0 %v1902_v6 }
 0x5c9   :  { %1645 = vmatprep.subr.bf16.mxu0 %v1920_v11 }
 0x5cc   :  { %1647 = vmatpush3.bf16.msra.mxu0 %v1920_v11 }
 0x5cd   :  { %1649 = vmatprep.subr.bf16.mxu0 %v1902_v6 }
 0x69a   :  { %v1560_v62 = vpop.f32.mrb[0].mxu0 }
 0x69b   :  { %v610_v63 = vadd.f32 %v1560_v62, %v194_v60  ;;  %v600_v0 = vpop.f32.mrb[1].mxu0 }
 0x69c   :  { %v609_v1 = vadd.f32 %v600_v0, %v189_v61 }
 0x69d   :  { %v1414_v2 = vmul.f32 -1.442695, %v610_v63 }
 0x69e   :  { %v1413_v3 = vmul.f32 -1.442695, %v609_v1 }
 0x69f   :  { %1748 = vpow2.f32 %v1414_v2 }
 0x6a0   :  { %1750 = vpow2.f32 %v1413_v3 }
 0x6a1   :  { %1752 = vtanh.f32 %v610_v63 }
 0x6a2   :  { %1754 = vtanh.f32 %v609_v1 }
 0x6a9   :  { %v1749_v4 = vpop.eup %1748 }
 0x6aa   :  { %v1751_v5 = vpop.eup %1750  ;;  %v620_v7 = vadd.f32 1.0, %v1749_v4 }
 0x6ab   :  { %v619_v8 = vadd.f32 1.0, %v1751_v5  ;;  %v1753_v24 = vpop.eup %1752 }
 0x6ac   :  { %1756 = vrcp.f32 %v620_v7  ;;  %v1755_v9 = vpop.eup %1754 }
 0x6ad   :  { %1758 = vrcp.f32 %v619_v8 }
 0x6b6   :  { %v1757_v10 = vpop.eup %1756 }
 0x6b7   :  { %v1759_v25 = vpop.eup %1758  ;;  %v626_v12 = vsel %vm2010_vm4, %v1753_v24, %v1757_v10 }
 0x6b8   :  { %633 = vrot.lane.b32.xlu1 %v626_v12, %s1845_s3  ;;  %v625_v13 = vsel %vm2010_vm4, %v1755_v9, %v1759_v25  ;;  %v628_v18 = vmul.f32 %v626_v12, %v511_v48 }
 0x6b9   :  { %631 = vrot.lane.b32.xlu0 %v625_v13, %s1845_s3  ;;  %v627_v20 = vmul.f32 %v625_v13, %v510_v51 }
 0x72a   :  { %v634_v14 = vpop.permute.xlu1 %633 }
 0x72b   :  { %v638_v15 = vmul.f32 %v634_v14, %v626_v12  ;;  %v632_v16 = vpop.permute.xlu0 %631 }
 0x72c   :  { %v637_v17 = vmul.f32 %v632_v16, %v625_v13  ;;  %v214_v16 = vadd.f32 %v1987_v28, %v2006_v36 }
 0x72d   :  { %643 = vrot.lane.b32.xlu1 %v638_v15, %s1846_s13 }
 0x72e   :  { %641 = vrot.lane.b32.xlu0 %v637_v17, %s1846_s13  ;;  %v209_v17 = vadd.f32 %v2006_v36, %v1989_v29 }
 0x79f   :  { %v644_v19 = vpop.permute.xlu1 %643 }
 0x7a0   :  { %v648_v21 = vadd.f32 %v644_v19, %v628_v18  ;;  %v642_v22 = vpop.permute.xlu0 %641 }
 0x7a1   :  { %v647_v23 = vadd.f32 %v642_v22, %v627_v20 }
 0x7a2   :  { %1760 = vtanh.f32 %v648_v21 }
 0x7a3   :  { %1762 = vtanh.f32 %v647_v23 }
 0x7ac   :  { %v1761_v37 = vpop.eup %1760 }
 0x7ad   :  { %v1763_v38 = vpop.eup %1762  ;;  %655 = vrot.lane.b32.xlu1 %v1761_v37, %s1845_s3 }
 0x7ae   :  { %653 = vrot.lane.b32.xlu0 %v1763_v38, %s1845_s3 }
 0x81f   :  { %v656_v39 = vpop.permute.xlu1 %655 }
 0x820   :  { %v660_v40 = vmul.f32 %v656_v39, %v626_v12  ;;  %v654_v41 = vpop.permute.xlu0 %653 }
 0x821   :  { %v659_v42 = vmul.f32 %v654_v41, %v625_v13 }
 0x822   :  { %665 = vrot.lane.b32.xlu1 %v660_v40, %s1846_s13 }
 0x823   :  { %663 = vrot.lane.b32.xlu0 %v659_v42, %s1846_s13 }
 0x894   :  { %v666_v44 = vpop.permute.xlu1 %665 }
 0x895   :  { %v664_v43 = vpop.permute.xlu0 %663 }
 0x896   :  { %1569 = vmatprep.mubr.msk.f32.mxu0 %vm256_vm5, %v664_v43 }
 0x897   :  { %1570 = vmatmul.mubr.msk.f32.vlgmr.msra.gmra.mrb[2].mxu0 %vm256_vm5, %v666_v44 }
 0x898   :  { %1651 = vmatpush3.bf16.msra.mxu0 %v1902_v6 }
 0x899   :  { %1653 = vmatprep.subr.bf16.mxu0 %v1920_v11 }
 0x89c   :  { %1655 = vmatpush3.bf16.msra.mxu0 %v1920_v11 }
 0x89d   :  { %1657 = vmatprep.subr.bf16.mxu0 %v1902_v6 }
 0x96a   :  { %v1571_v47 = vpop.f32.mrb[2].mxu0 }
 0x96b   :  { %v747_v48 = vadd.f32 %v1571_v47, %v204_v45  ;;  %v737_v50 = vpop.f32.mrb[3].mxu0 }
 0x96c   :  { %v746_v51 = vadd.f32 %v737_v50, %v199_v46 }
 0x96d   :  { %v1418_v52 = vmul.f32 -1.442695, %v747_v48 }
 0x96e   :  { %v1417_v53 = vmul.f32 -1.442695, %v746_v51 }
 0x96f   :  { %1764 = vpow2.f32 %v1418_v52 }
 0x970   :  { %1766 = vpow2.f32 %v1417_v53 }
 0x971   :  { %1768 = vtanh.f32 %v747_v48 }
 0x972   :  { %1770 = vtanh.f32 %v746_v51 }
 0x979   :  { %v1765_v54 = vpop.eup %1764 }
 0x97a   :  { %v1767_v55 = vpop.eup %1766  ;;  %v757_v56 = vadd.f32 1.0, %v1765_v54 }
 0x97b   :  { %v756_v57 = vadd.f32 1.0, %v1767_v55  ;;  %v1769_v26 = vpop.eup %1768 }
 0x97c   :  { %1772 = vrcp.f32 %v757_v56  ;;  %v1771_v58 = vpop.eup %1770 }
 0x97d   :  { %1774 = vrcp.f32 %v756_v57 }
 0x986   :  { %v1773_v59 = vpop.eup %1772 }
 0x987   :  { %v1775_v27 = vpop.eup %1774  ;;  %v763_v60 = vsel %vm2010_vm4, %v1769_v26, %v1773_v59 }
 0x988   :  { %770 = vrot.lane.b32.xlu1 %v763_v60, %s1845_s3  ;;  %v762_v61 = vsel %vm2010_vm4, %v1771_v58, %v1775_v27  ;;  %v765_v2 = vmul.f32 %v763_v60, %v648_v21 }
 0x989   :  { %768 = vrot.lane.b32.xlu0 %v762_v61, %s1845_s3  ;;  %v764_v4 = vmul.f32 %v762_v61, %v647_v23 }
 0x9fa   :  { %v771_v62 = vpop.permute.xlu1 %770 }
 0x9fb   :  { %v775_v63 = vmul.f32 %v771_v62, %v763_v60  ;;  %v769_v0 = vpop.permute.xlu0 %768  ;;  %v224_v62 = vadd.f32 %v1991_v30, %v2006_v36 }
 0x9fc   :  { %v774_v1 = vmul.f32 %v769_v0, %v762_v61 }
 0x9fd   :  { %780 = vrot.lane.b32.xlu1 %v775_v63, %s1846_s13  ;;  %v219_v63 = vadd.f32 %v2006_v36, %v1993_v31 }
 0x9fe   :  { %778 = vrot.lane.b32.xlu0 %v774_v1, %s1846_s13 }
 0xa6f   :  { %v781_v3 = vpop.permute.xlu1 %780 }
 0xa70   :  { %v785_v5 = vadd.f32 %v781_v3, %v765_v2  ;;  %v779_v7 = vpop.permute.xlu0 %778 }
 0xa71   :  { %v784_v8 = vadd.f32 %v779_v7, %v764_v4 }
 0xa72   :  { %1776 = vtanh.f32 %v785_v5 }
 0xa73   :  { %1778 = vtanh.f32 %v784_v8 }
 0xa7c   :  { %v1777_v24 = vpop.eup %1776 }
 0xa7d   :  { %v1779_v9 = vpop.eup %1778  ;;  %792 = vrot.lane.b32.xlu1 %v1777_v24, %s1845_s3 }
 0xa7e   :  { %790 = vrot.lane.b32.xlu0 %v1779_v9, %s1845_s3 }
 0xaef   :  { %v793_v10 = vpop.permute.xlu1 %792 }
 0xaf0   :  { %v797_v25 = vmul.f32 %v793_v10, %v763_v60  ;;  %v791_v12 = vpop.permute.xlu0 %790 }
 0xaf1   :  { %v796_v13 = vmul.f32 %v791_v12, %v762_v61 }
 0xaf2   :  { %802 = vrot.lane.b32.xlu1 %v797_v25, %s1846_s13 }
 0xaf3   :  { %800 = vrot.lane.b32.xlu0 %v796_v13, %s1846_s13 }
 0xb64   :  { %v803_v15 = vpop.permute.xlu1 %802 }
 0xb65   :  { %v801_v14 = vpop.permute.xlu0 %800 }
 0xb66   :  { %1580 = vmatprep.mubr.msk.f32.mxu0 %vm256_vm5, %v801_v14 }
 0xb67   :  { %1581 = vmatmul.mubr.msk.f32.vlgmr.msra.gmra.mrb[4].mxu0 %vm256_vm5, %v803_v15 }
 0xb68   :  { %1659 = vmatpush3.bf16.msra.mxu0 %v1902_v6 }
 0xb69   :  { %1661 = vmatprep.subr.bf16.mxu0 %v1920_v11 }
 0xb6c   :  { %1663 = vmatpush3.bf16.msra.mxu0 %v1920_v11 }
 0xb6d   :  { %1665 = vmatprep.subr.bf16.mxu0 %v1902_v6 }
 0xc3a   :  { %v1582_v18 = vpop.f32.mrb[4].mxu0 }
 0xc3b   :  { %v884_v19 = vadd.f32 %v1582_v18, %v214_v16  ;;  %v874_v20 = vpop.f32.mrb[5].mxu0 }
 0xc3c   :  { %v883_v21 = vadd.f32 %v874_v20, %v209_v17 }
 0xc3d   :  { %v1422_v22 = vmul.f32 -1.442695, %v884_v19 }
 0xc3e   :  { %v1421_v23 = vmul.f32 -1.442695, %v883_v21 }
 0xc3f   :  { %1780 = vpow2.f32 %v1422_v22 }
 0xc40   :  { %1782 = vpow2.f32 %v1421_v23 }
 0xc41   :  { %1784 = vtanh.f32 %v884_v19 }
 0xc42   :  { %1786 = vtanh.f32 %v883_v21 }
 0xc49   :  { %v1781_v37 = vpop.eup %1780 }
 0xc4a   :  { %v1783_v38 = vpop.eup %1782  ;;  %v894_v39 = vadd.f32 1.0, %v1781_v37 }
 0xc4b   :  { %v893_v40 = vadd.f32 1.0, %v1783_v38  ;;  %v1785_v28 = vpop.eup %1784 }
 0xc4c   :  { %1788 = vrcp.f32 %v894_v39  ;;  %v1787_v41 = vpop.eup %1786 }
 0xc4d   :  { %1790 = vrcp.f32 %v893_v40 }
 0xc56   :  { %v1789_v42 = vpop.eup %1788 }
 0xc57   :  { %v1791_v29 = vpop.eup %1790  ;;  %v900_v43 = vsel %vm2010_vm4, %v1785_v28, %v1789_v42 }
 0xc58   :  { %907 = vrot.lane.b32.xlu1 %v900_v43, %s1845_s3  ;;  %v899_v44 = vsel %vm2010_vm4, %v1787_v41, %v1791_v29  ;;  %v902_v50 = vmul.f32 %v900_v43, %v785_v5 }
 0xc59   :  { %905 = vrot.lane.b32.xlu0 %v899_v44, %s1845_s3  ;;  %v901_v52 = vmul.f32 %v899_v44, %v784_v8 }
 0xcca   :  { %v908_v45 = vpop.permute.xlu1 %907 }
 0xccb   :  { %v912_v46 = vmul.f32 %v908_v45, %v900_v43  ;;  %v906_v47 = vpop.permute.xlu0 %905 }
 0xccc   :  { %v911_v48 = vmul.f32 %v906_v47, %v899_v44 }
 0xccd   :  { %917 = vrot.lane.b32.xlu1 %v912_v46, %s1846_s13 }
 0xcce   :  { %915 = vrot.lane.b32.xlu0 %v911_v48, %s1846_s13 }
 0xd3f   :  { %v918_v51 = vpop.permute.xlu1 %917 }
 0xd40   :  { %v922_v53 = vadd.f32 %v918_v51, %v902_v50  ;;  %v916_v54 = vpop.permute.xlu0 %915 }
 0xd41   :  { %v921_v55 = vadd.f32 %v916_v54, %v901_v52 }
 0xd42   :  { %1792 = vtanh.f32 %v922_v53 }
 0xd43   :  { %1794 = vtanh.f32 %v921_v55 }
 0xd4c   :  { %v1793_v56 = vpop.eup %1792 }
 0xd4d   :  { %v1795_v57 = vpop.eup %1794  ;;  %929 = vrot.lane.b32.xlu1 %v1793_v56, %s1845_s3 }
 0xd4e   :  { %927 = vrot.lane.b32.xlu0 %v1795_v57, %s1845_s3 }
 0xdbf   :  { %v930_v26 = vpop.permute.xlu1 %929 }
 0xdc0   :  { %v934_v58 = vmul.f32 %v930_v26, %v900_v43  ;;  %v928_v59 = vpop.permute.xlu0 %927  ;;  %v234_v43 = vadd.f32 %v1995_v32, %v2006_v36 }
 0xdc1   :  { %v933_v27 = vmul.f32 %v928_v59, %v899_v44  ;;  %v229_v44 = vadd.f32 %v2006_v36, %v1997_v33 }
 0xdc2   :  { %939 = vrot.lane.b32.xlu1 %v934_v58, %s1846_s13 }
 0xdc3   :  { %937 = vrot.lane.b32.xlu0 %v933_v27, %s1846_s13 }
 0xe34   :  { %v940_v61 = vpop.permute.xlu1 %939 }
 0xe35   :  { %v938_v60 = vpop.permute.xlu0 %937 }
 0xe36   :  { %1591 = vmatprep.mubr.msk.f32.mxu0 %vm256_vm5, %v938_v60 }
 0xe37   :  { %1592 = vmatmul.mubr.msk.f32.vlgmr.msra.gmra.mrb[6].mxu0 %vm256_vm5, %v940_v61 }
 0xe38   :  { %1667 = vmatpush3.bf16.msra.mxu0 %v1902_v6 }
 0xe39   :  { %1669 = vmatprep.subr.bf16.mxu0 %v1920_v11 }
 0xe3c   :  { %1671 = vmatpush3.bf16.msra.mxu0 %v1920_v11 }
 0xe3d   :  { %1673 = vmatprep.subr.bf16.mxu0 %v1902_v6 }
 0xf0a   :  { %v1593_v0 = vpop.f32.mrb[6].mxu0 }
 0xf0b   :  { %v1021_v1 = vadd.f32 %v1593_v0, %v224_v62  ;;  %v1011_v2 = vpop.f32.mrb[7].mxu0 }
 0xf0c   :  { %v1020_v3 = vadd.f32 %v1011_v2, %v219_v63 }
 0xf0d   :  { %v1426_v4 = vmul.f32 -1.442695, %v1021_v1 }
 0xf0e   :  { %v1425_v5 = vmul.f32 -1.442695, %v1020_v3 }
 0xf0f   :  { %1796 = vpow2.f32 %v1426_v4 }
 0xf10   :  { %1798 = vpow2.f32 %v1425_v5 }
 0xf11   :  { %1800 = vtanh.f32 %v1021_v1 }
 0xf12   :  { %1802 = vtanh.f32 %v1020_v3 }
 0xf19   :  { %v1797_v7 = vpop.eup %1796 }
 0xf1a   :  { %v1799_v8 = vpop.eup %1798  ;;  %v1031_v24 = vadd.f32 1.0, %v1797_v7 }
 0xf1b   :  { %v1030_v9 = vadd.f32 1.0, %v1799_v8  ;;  %v1801_v30 = vpop.eup %1800 }
 0xf1c   :  { %1804 = vrcp.f32 %v1031_v24  ;;  %v1803_v10 = vpop.eup %1802 }
 0xf1d   :  { %1806 = vrcp.f32 %v1030_v9 }
 0xf26   :  { %v1805_v25 = vpop.eup %1804 }
 0xf27   :  { %v1807_v31 = vpop.eup %1806  ;;  %v1037_v12 = vsel %vm2010_vm4, %v1801_v30, %v1805_v25  ;;  %v244_v30 = vadd.f32 %v1999_v34, %v2006_v36 }
 0xf28   :  { %1044 = vrot.lane.b32.xlu1 %v1037_v12, %s1845_s3  ;;  %v1036_v13 = vsel %vm2010_vm4, %v1803_v10, %v1807_v31  ;;  %v1039_v18 = vmul.f32 %v1037_v12, %v922_v53  ;;  %v239_v10 = vadd.f32 %v2006_v36, %v2001_v35 }
 0xf29   :  { %1042 = vrot.lane.b32.xlu0 %v1036_v13, %s1845_s3  ;;  %v1038_v20 = vmul.f32 %v1036_v13, %v921_v55 }
 0xf9a   :  { %v1045_v14 = vpop.permute.xlu1 %1044 }
 0xf9b   :  { %v1049_v15 = vmul.f32 %v1045_v14, %v1037_v12  ;;  %v1043_v16 = vpop.permute.xlu0 %1042 }
 0xf9c   :  { %v1048_v17 = vmul.f32 %v1043_v16, %v1036_v13 }
 0xf9d   :  { %1054 = vrot.lane.b32.xlu1 %v1049_v15, %s1846_s13 }
 0xf9e   :  { %1052 = vrot.lane.b32.xlu0 %v1048_v17, %s1846_s13 }
0x100f   :  { %v1055_v19 = vpop.permute.xlu1 %1054 }
0x1010   :  { %v1059_v21 = vadd.f32 %v1055_v19, %v1039_v18  ;;  %v1053_v22 = vpop.permute.xlu0 %1052 }
0x1011   :  { %v1058_v23 = vadd.f32 %v1053_v22, %v1038_v20 }
0x1012   :  { %1808 = vtanh.f32 %v1059_v21 }
0x1013   :  { %1810 = vtanh.f32 %v1058_v23 }
0x101c   :  { %v1809_v37 = vpop.eup %1808 }
0x101d   :  { %v1811_v38 = vpop.eup %1810  ;;  %1066 = vrot.lane.b32.xlu1 %v1809_v37, %s1845_s3 }
0x101e   :  { %1064 = vrot.lane.b32.xlu0 %v1811_v38, %s1845_s3 }
0x108f   :  { %v1067_v39 = vpop.permute.xlu1 %1066 }
0x1090   :  { %v1071_v40 = vmul.f32 %v1067_v39, %v1037_v12  ;;  %v1065_v28 = vpop.permute.xlu0 %1064 }
0x1091   :  { %v1070_v41 = vmul.f32 %v1065_v28, %v1036_v13 }
0x1092   :  { %1076 = vrot.lane.b32.xlu1 %v1071_v40, %s1846_s13 }
0x1093   :  { %1074 = vrot.lane.b32.xlu0 %v1070_v41, %s1846_s13 }
0x1104   :  { %v1077_v29 = vpop.permute.xlu1 %1076 }
0x1105   :  { %v1075_v42 = vpop.permute.xlu0 %1074 }
0x1106   :  { %1602 = vmatprep.mubr.msk.f32.mxu0 %vm256_vm5, %v1075_v42 }
0x1107   :  { %1603 = vmatmul.mubr.msk.f32.vlgmr.msra.gmra.mrb[8].mxu0 %vm256_vm5, %v1077_v29 }
0x1108   :  { %1675 = vmatpush3.bf16.msra.mxu0 %v1902_v6 }
0x1109   :  { %1677 = vmatprep.subr.bf16.mxu0 %v1920_v11 }
0x110c   :  { %1679 = vmatpush3.bf16.msra.mxu0 %v1920_v11 }
0x11da   :  { %v1604_v45 = vpop.f32.mrb[8].mxu0 }
0x11db   :  { %v1158_v46 = vadd.f32 %v1604_v45, %v234_v43  ;;  %v1148_v47 = vpop.f32.mrb[9].mxu0  ;;  %v1435_v45 = vld [vmem:[%s2187_s4] ss:$0 sm:$0xff] }
0x11dc   :  { %v1157_v48 = vadd.f32 %v1148_v47, %v229_v44 }
0x11dd   :  { %v1430_v50 = vmul.f32 -1.442695, %v1158_v46 }
0x11de   :  { %v1429_v51 = vmul.f32 -1.442695, %v1157_v48 }
0x11df   :  { %1812 = vpow2.f32 %v1430_v50 }
0x11e0   :  { %1814 = vpow2.f32 %v1429_v51 }
0x11e1   :  { %1816 = vtanh.f32 %v1158_v46  ;;  %v11_v46 = vstv %s2188_s5 }
0x11e2   :  { %1818 = vtanh.f32 %v1157_v48  ;;  %12 = vst [vmem:[#allocation2] sm:$0x1] %v11_v46 }
0x11e9   :  { %v1813_v52 = vpop.eup %1812 }
0x11ea   :  { %v1815_v6 = vpop.eup %1814  ;;  %v1168_v53 = vadd.f32 1.0, %v1813_v52 }
0x11eb   :  { %v1167_v11 = vadd.f32 1.0, %v1815_v6  ;;  %v1817_v32 = vpop.eup %1816 }
0x11ec   :  { %1820 = vrcp.f32 %v1168_v53  ;;  %v1819_v54 = vpop.eup %1818 }
0x11ed   :  { %1822 = vrcp.f32 %v1167_v11 }
0x11f6   :  { %v1821_v55 = vpop.eup %1820 }
0x11f7   :  { %v1823_v33 = vpop.eup %1822  ;;  %v1174_v56 = vsel %vm2010_vm4, %v1817_v32, %v1821_v55 }
0x11f8   :  { %1181 = vrot.lane.b32.xlu1 %v1174_v56, %s1845_s3  ;;  %v1173_v57 = vsel %vm2010_vm4, %v1819_v54, %v1823_v33  ;;  %v1176_v60 = vmul.f32 %v1174_v56, %v1059_v21  ;;  %v1436_v33 = vld [vmem:[#allocation2] ss:$0 sm:$0xff] }
0x11f9   :  { %1179 = vrot.lane.b32.xlu0 %v1173_v57, %s1845_s3  ;;  %v1175_v62 = vmul.f32 %v1173_v57, %v1058_v23 }
0x126a   :  { %v1182_v26 = vpop.permute.xlu1 %1181 }
0x126b   :  { %v1186_v58 = vmul.f32 %v1182_v26, %v1174_v56  ;;  %v1180_v59 = vpop.permute.xlu0 %1179 }
0x126c   :  { %v1185_v27 = vmul.f32 %v1180_v59, %v1173_v57 }
0x126d   :  { %1191 = vrot.lane.b32.xlu1 %v1186_v58, %s1846_s13 }
0x126e   :  { %1189 = vrot.lane.b32.xlu0 %v1185_v27, %s1846_s13 }
0x12df   :  { %v1192_v61 = vpop.permute.xlu1 %1191 }
0x12e0   :  { %v1196_v63 = vadd.f32 %v1192_v61, %v1176_v60  ;;  %v1190_v0 = vpop.permute.xlu0 %1189 }
0x12e1   :  { %v1195_v1 = vadd.f32 %v1190_v0, %v1175_v62 }
0x12e2   :  { %1824 = vtanh.f32 %v1196_v63 }
0x12e3   :  { %1826 = vtanh.f32 %v1195_v1 }
0x12ec   :  { %v1825_v2 = vpop.eup %1824 }
0x12ed   :  { %v1827_v3 = vpop.eup %1826  ;;  %1203 = vrot.lane.b32.xlu1 %v1825_v2, %s1845_s3 }
0x12ee   :  { %1201 = vrot.lane.b32.xlu0 %v1827_v3, %s1845_s3 }
0x135f   :  { %v1204_v4 = vpop.permute.xlu1 %1203 }
0x1360   :  { %v1208_v5 = vmul.f32 %v1204_v4, %v1174_v56  ;;  %v1202_v7 = vpop.permute.xlu0 %1201 }
0x1361   :  { %v1207_v8 = vmul.f32 %v1202_v7, %v1173_v57 }
0x1362   :  { %1213 = vrot.lane.b32.xlu1 %v1208_v5, %s1846_s13 }
0x1363   :  { %1211 = vrot.lane.b32.xlu0 %v1207_v8, %s1846_s13 }
0x13d4   :  { %v1214_v9 = vpop.permute.xlu1 %1213 }
0x13d5   :  { %v1212_v24 = vpop.permute.xlu0 %1211 }
0x13d6   :  { %1613 = vmatprep.mubr.msk.f32.mxu0 %vm256_vm5, %v1212_v24 }
0x13d7   :  { %1614 = vmatmul.mubr.msk.f32.vlgmr.msra.gmra.mrb[10].mxu0 %vm256_vm5, %v1214_v9 }
0x14aa   :  { %v1615_v25 = vpop.f32.mrb[10].mxu0 }
0x14ab   :  { %v1295_v31 = vadd.f32 %v1615_v25, %v244_v30  ;;  %v1285_v12 = vpop.f32.mrb[11].mxu0 }
0x14ac   :  { %v1294_v13 = vadd.f32 %v1285_v12, %v239_v10 }
0x14ad   :  { %v1434_v14 = vmul.f32 -1.442695, %v1295_v31 }
0x14ae   :  { %v1433_v15 = vmul.f32 -1.442695, %v1294_v13 }
0x14af   :  { %1828 = vpow2.f32 %v1434_v14 }
0x14b0   :  { %1830 = vpow2.f32 %v1433_v15 }
0x14b1   :  { %1832 = vtanh.f32 %v1295_v31 }
0x14b2   :  { %1834 = vtanh.f32 %v1294_v13 }
0x14b9   :  { %v1829_v16 = vpop.eup %1828 }
0x14ba   :  { %v1831_v17 = vpop.eup %1830  ;;  %v1305_v18 = vadd.f32 1.0, %v1829_v16 }
0x14bb   :  { %v1304_v19 = vadd.f32 1.0, %v1831_v17  ;;  %v1833_v34 = vpop.eup %1832 }
0x14bc   :  { %1836 = vrcp.f32 %v1305_v18  ;;  %v1835_v20 = vpop.eup %1834 }
0x14bd   :  { %1838 = vrcp.f32 %v1304_v19 }
0x14c6   :  { %v1837_v21 = vpop.eup %1836 }
0x14c7   :  { %v1839_v35 = vpop.eup %1838  ;;  %v1311_v36 = vsel %vm2010_vm4, %v1833_v34, %v1837_v21 }
0x14c8   :  { %1318 = vrot.lane.b32.xlu1 %v1311_v36, %s1845_s3  ;;  %v1310_v22 = vsel %vm2010_vm4, %v1835_v20, %v1839_v35  ;;  %v1313_v40 = vmul.f32 %v1311_v36, %v1196_v63 }
0x14c9   :  { %1316 = vrot.lane.b32.xlu0 %v1310_v22, %s1845_s3  ;;  %v1312_v41 = vmul.f32 %v1310_v22, %v1195_v1 }
0x153a   :  { %v1319_v23 = vpop.permute.xlu1 %1318 }
0x153b   :  { %v1323_v37 = vmul.f32 %v1319_v23, %v1311_v36  ;;  %v1317_v38 = vpop.permute.xlu0 %1316 }
0x153c   :  { %v1322_v39 = vmul.f32 %v1317_v38, %v1310_v22 }
0x153d   :  { %1328 = vrot.lane.b32.xlu1 %v1323_v37, %s1846_s13 }
0x153e   :  { %1326 = vrot.lane.b32.xlu0 %v1322_v39, %s1846_s13 }
0x15af   :  { %v1329_v28 = vpop.permute.xlu1 %1328 }
0x15b0   :  { %v1333_v42 = vadd.f32 %v1329_v28, %v1313_v40  ;;  %v1327_v29 = vpop.permute.xlu0 %1326 }
0x15b1   :  { %v1332_v43 = vadd.f32 %v1327_v29, %v1312_v41 }
0x15b2   :  { %1840 = vtanh.f32 %v1333_v42 }
0x15b3   :  { %1842 = vtanh.f32 %v1332_v43 }
0x15bc   :  { %v1841_v49 = vpop.eup %1840 }
0x15bd   :  { %v1843_v44 = vpop.eup %1842  ;;  %1340 = vrot.lane.b32.xlu1 %v1841_v49, %s1845_s3 }
0x15be   :  { %1338 = vrot.lane.b32.xlu0 %v1843_v44, %s1845_s3 }
0x15c2   :  { %1352 = vrot.lane.b32.xlu0 %v1435_v45, %s1847_s16 }
0x162f   :  { %v1341_v47 = vpop.permute.xlu1 %1340 }
0x1630   :  { %v1339_v48 = vpop.permute.xlu0 %1338  ;;  %v1345_v50 = vmul.f32 %v1341_v47, %v1311_v36 }
0x1631   :  { %v1344_v51 = vmul.f32 %v1339_v48, %v1310_v22 }
0x1634   :  { %v1353_v52 = vpop.permute.xlu0 %1352 }
0x1635   :  { %v1355_v6 = vmul.f32 %v1353_v52, %v1344_v51  ;;  %v1356_v53 = vmul.f32 %v1353_v52, %v1345_v50 }
0x1637   :  { %1361 = vrot.lane.b32.xlu0 %v1356_v53, %s1846_s13  ;;  %1359 = vrot.lane.b32.xlu1 %v1355_v6, %s1846_s13 }
0x16a9   :  { %v1362_v11 = vpop.permute.xlu0 %1361  ;;  %v1360_v32 = vpop.permute.xlu1 %1359 }
0x16aa   :  { %v1368_v54 = vsel %vm256_vm5, %v1362_v11, 0.0  ;;  %v1365_v55 = vsel %vm256_vm5, %v1360_v32, 0.0 }
0x16ab   :  { %1369 = vadd.xlane.f32.xlu0 %v1368_v54  ;;  %1366 = vadd.xlane.f32.xlu1 %v1365_v55 }
0x1738   :  { %v1370_v56 = vpop.xlane.xlu0 %1369  ;;  %v1367_v57 = vpop.xlane.xlu1 %1366 }
0x1739   :  { %v1379_v26 = vadd.f32 %v1436_v33, %v1370_v56  ;;  %v1378_v58 = vadd.f32 %v1436_v33, %v1367_v57 }
0x173b   :  { %1382 = vst.msk [vmem:[%s2189_s6 + $0x8] sm:$0xff] %vm1380_vm6, %v1379_v26  ;;  %1381 = vst.msk [vmem:[%s2189_s6] sm:$0xff] %vm1380_vm6, %v1378_v58 }

</bundles_post_ra>
